<compile_context>
chip_gen: v7x
topology: tpu7x:2x2x1
jax: 0.10.0
libtpu: 0.0.40
codegen_flags: <defaults>
</compile_context>

<pallas_src>
import math

import jax
import jax.numpy as jnp
from jax.experimental import pallas as pl
from jax.experimental.pallas import tpu as pltpu


def _identity_kernel(x_ref, o_ref):
    # BasicModule.forward performs no ops -> pure tile pass-through.
    o_ref[...] = x_ref[...]


def _sublane_multiple(dtype) -> int:
    """Native packed sublane tile for the dtype (f32:8, bf16:16, int8/fp8:32)."""
    itemsize = jnp.dtype(dtype).itemsize
    if itemsize >= 4:
        return 8
    if itemsize == 2:
        return 16
    return 32


def _choose_slab(total: int, itemsize: int, sub_mult: int):
    """Pick (rows, cols, block_rows) for a lane/sublane-dense identity copy."""
    LANE = 128
    target_block_bytes = 2 * 1024 * 1024  # ~2 MiB per buffer.

    if total % LANE != 0:
        # Element count not 128-divisible: single full-extent block, no padding.
        # TODO(synk): huge non-128-divisible inputs would need a padded
        #             multi-block path; unnecessary for this module's shapes.
        return 1, total, 1

    # Widest lane dim (power-of-2 multiple of 128 dividing `total`) that keeps
    # a single sublane-tile row-block under the VMEM target.
    max_cols = max(LANE, target_block_bytes // (sub_mult * itemsize))
    cols = LANE
    while cols * 2 <= max_cols and total % (cols * 2) == 0:
        cols *= 2

    # Prefer a factorization whose row count is a multiple of the packed
    # sublane tile (dense sublanes); shrink cols toward 128 if needed.
    best_cols = cols
    c = cols
    while c >= LANE:
        if (total // c) % sub_mult == 0:
            best_cols = c
            break
        c //= 2
    cols = best_cols
    rows = total // cols

    if rows % sub_mult != 0:
        # Full-extent row block (exempt from the (8,128) rule).
        return rows, cols, rows

    # Block rows: multiple of the sublane tile, exact divisor of rows (no
    # padding / masked stores), sized near the VMEM target.
    want = max(sub_mult, target_block_bytes // (cols * itemsize))
    limit = max(1, want // sub_mult)
    q = rows // sub_mult
    best = 1
    d = 1
    while d * d <= q:
        if q % d == 0:
            if d <= limit:
                best = max(best, d)
            if (q // d) <= limit:
                best = max(best, q // d)
        d += 1
    return rows, cols, best * sub_mult


def basic_module_forward(x: jax.Array) -> jax.Array:
    """Pallas equivalent of BasicModule().forward(x): a tiled identity copy."""
    orig_shape = x.shape
    dtype = x.dtype
    itemsize = jnp.dtype(dtype).itemsize
    total = int(math.prod(orig_shape)) if orig_shape else 1

    rows, cols, block_rows = _choose_slab(total, itemsize, _sublane_multiple(dtype))
    x2d = x.reshape(rows, cols)
    grid = (rows // block_rows,)

    out2d = pl.pallas_call(
        _identity_kernel,
        out_shape=jax.ShapeDtypeStruct((rows, cols), dtype),
        grid_spec=pltpu.PrefetchScalarGridSpec(
            num_scalar_prefetch=0,
            grid=grid,
            in_specs=[pl.BlockSpec((block_rows, cols), lambda i: (i, 0))],
            out_specs=pl.BlockSpec((block_rows, cols), lambda i: (i, 0)),
        ),
        compiler_params=pltpu.CompilerParams(
            dimension_semantics=("parallel",),
            vmem_limit_bytes=32 * 1024 * 1024,
        ),
        cost_estimate=pl.CostEstimate(
            flops=0,
            transcendentals=0,
            bytes_accessed=2 * total * itemsize,
        ),
        # Pure identity: let XLA reuse the input HBM buffer when donatable.
        input_output_aliases={0: 0},
    )(x2d)

    return out2d.reshape(orig_shape)


if __name__ == "__main__":
    key = jax.random.PRNGKey(0)
    # Small NCHW input consistent with a typical conv-style module.
    x = jax.random.normal(key, (2, 4, 16, 16), dtype=jnp.float32)

    fwd = jax.jit(basic_module_forward)
    y = fwd(x)
    y = jax.block_until_ready(y)

    # Sanity check: identity semantics (the reference forward performs no ops).
    assert y.shape == x.shape and y.dtype == x.dtype
    assert bool(jnp.all(y == x))

    print("KERNEL_OK")
</pallas_src>

<mosaic_0001>
module attributes {stable_mosaic.version = 11 : i64} {
  func.func @_identity_kernel(%arg0: i32, %arg1: memref<8x256xf32, #tpu.memory_space<vmem>>, %arg2: memref<8x256xf32, #tpu.memory_space<vmem>>) attributes {dimension_semantics = [#tpu.dimension_semantics<parallel>], iteration_bounds = array<i64: 1>, scalar_prefetch = 0 : i64, scratch_operands = 0 : i64, tpu.core_type = #tpu.core_type<tc>, window_params = [{transform_indices = @transform_0, window_bounds = array<i64: 8, 256>}, {transform_indices = @transform_1, window_bounds = array<i64: 8, 256>}]} {
    %c0 = arith.constant 0 : index
    %c0_0 = arith.constant 0 : index
    %0 = vector.load %arg1[%c0, %c0_0] : memref<8x256xf32, #tpu.memory_space<vmem>>, vector<8x256xf32>
    %c0_1 = arith.constant 0 : index
    %c0_2 = arith.constant 0 : index
    %1 = vector.load %arg2[%c0_1, %c0_2] : memref<8x256xf32, #tpu.memory_space<vmem>>, vector<8x256xf32>
    tpu.vector_store %arg2[%c0_1, %c0_2], %0 {strides = array<i32>} : memref<8x256xf32, #tpu.memory_space<vmem>>, vector<8x256xf32>,
    return
  }
  func.func @transform_0(%arg0: i32) -> (i32, i32) {
    %c0_i32 = arith.constant 0 : i32
    %c0_i32_0 = arith.constant 0 : i32
    return %arg0, %c0_i32 : i32, i32
  }
  func.func @transform_1(%arg0: i32) -> (i32, i32) {
    %c0_i32 = arith.constant 0 : i32
    %c0_i32_0 = arith.constant 0 : i32
    return %arg0, %c0_i32 : i32, i32
  }
}

</mosaic_0001>

<bundles_post_ra>
// kernel: basic_module_forward.1
= control target key start
LH: loop header
LB: loop body
LE: loop exit
PB: predicated region body
PF: predicated region fallthrough
CT: control target
= control target key end

     0   :  { %s38_s0 = inlined_call_operand.vmem [shape: f32[8,256], index: 0, kind: input, shape index: {}, may-alias: {0,1}]   ;;  %s39_s1 = inlined_call_operand.vmem [shape: f32[8,256], index: 1, kind: output, shape index: {}, may-alias: {0,1}]  }
   0x1   :  { %v8_v0 = vld [vmem:[%s38_s0] sm:$0xff]  ;;  %v9_v1 = vld [vmem:[%s38_s0 + $0x8] sm:$0xff] }
   0x2   :  { %10 = vst [vmem:[%s39_s1] sm:$0xff] %v8_v0  ;;  %11 = vst [vmem:[%s39_s1 + $0x8] sm:$0xff] %v9_v1 }

</bundles_post_ra>
